<compile_context>
chip_gen: v6e
topology: v6e:2x2x1
jax: 0.10.0
libtpu: 0.0.40
codegen_flags: <defaults>
</compile_context>

<pallas_src>
import functools
import math

import jax
import jax.numpy as jnp
from jax.experimental import pallas as pl
from jax.experimental.pallas import tpu as pltpu


# --------------------------------------------------------------------------------------
# Prologue: row-wise L2 normalization, 1/T folded into the image rows, bf16 outputs.
# --------------------------------------------------------------------------------------
def _normalize_kernel(img_ref, txt_ref, img_out_ref, txt_out_ref, *, inv_temp):
    eps_sq = jnp.float32(1e-24)      # (F.normalize eps = 1e-12) ** 2

    img = img_ref[...].astype(jnp.float32)
    iss = jnp.sum(img * img, axis=-1, keepdims=True)
    img_scale = jax.lax.rsqrt(jnp.maximum(iss, eps_sq)) * jnp.float32(inv_temp)
    img_out_ref[...] = (img * img_scale).astype(img_out_ref.dtype)

    txt = txt_ref[...].astype(jnp.float32)
    tss = jnp.sum(txt * txt, axis=-1, keepdims=True)
    txt_scale = jax.lax.rsqrt(jnp.maximum(tss, eps_sq))
    txt_out_ref[...] = (txt * txt_scale).astype(txt_out_ref.dtype)


def _normalize_embeds(image_embeds, text_embeds, inv_temp, *, block_rows=512):
    B, D = image_embeds.shape
    tr = min(block_rows, B)
    assert B % tr == 0
    spec = pl.BlockSpec((tr, D), lambda r: (r, 0))
    return pl.pallas_call(
        functools.partial(_normalize_kernel, inv_temp=float(inv_temp)),
        out_shape=(jax.ShapeDtypeStruct((B, D), jnp.bfloat16),
                   jax.ShapeDtypeStruct((B, D), jnp.bfloat16)),
        grid_spec=pltpu.PrefetchScalarGridSpec(
            num_scalar_prefetch=0,
            grid=(B // tr,),
            in_specs=[spec, spec],
            out_specs=(spec, spec)),
        compiler_params=pltpu.CompilerParams(
            dimension_semantics=("parallel",)),
    )(image_embeds, text_embeds)


# --------------------------------------------------------------------------------------
# Main kernel: tiled logits + online row/column exp-sums + scalar loss finalize.
# --------------------------------------------------------------------------------------
def _contrastive_loss_kernel(img_ref, txt_ref, out_ref,
                             row_sum, col_sum, row_lse_acc,
                             *, shift, batch):
    i = pl.program_id(0)              # image (row) tile index   -- outer axis
    j = pl.program_id(1)              # text (column) tile index -- inner / streamed axis
    num_i = pl.num_programs(0)
    num_j = pl.num_programs(1)
    tq = img_ref.shape[0]
    tk = txt_ref.shape[0]

    @pl.when((i == 0) & (j == 0))
    def _init_global():
        row_lse_acc[...] = jnp.zeros_like(row_lse_acc)

    @pl.when(j == 0)
    def _init_row_tile():
        row_sum[...] = jnp.zeros_like(row_sum)

    @pl.when(i == 0)
    def _init_col_tile():
        col_sum[j] = jnp.zeros((8, tk), jnp.float32)

    # logits tile = (img_n / T) @ txt_n.T   (bf16 operands, f32 MXU accumulation).
    logits = jax.lax.dot_general(
        img_ref[...], txt_ref[...],
        dimension_numbers=(((1,), (1,)), ((), ())),
        preferred_element_type=jnp.float32)

    # Unshifted exp: every logit lies in [-1/T, 1/T]; the wrapper statically enables a
    # constant 1/T shift only for very small temperatures (f32 safety).
    if shift != 0.0:
        e = jnp.exp(logits - jnp.float32(shift))
    else:
        e = jnp.exp(logits)

    # exp of the masked diagonal logit (-1.0), shift-adjusted (trace-time constant).
    exp_masked = jnp.float32(math.exp(-1.0 - shift))

    row0 = i * tq
    col0 = j * tk
    hits_diag = (row0 < col0 + tk) & (col0 < row0 + tq)

    def _accumulate(et):
        # Row partial: one cross-lane (XLU) reduce per tile.
        row_sum[...] += jnp.sum(et, axis=1, keepdims=True)
        # Column partial at (8, tk) sublane granularity: pure vreg-wise VPU adds;
        # the final 8 -> 1 cross-sublane reduce is deferred to the finalize step.
        col_sum[j] = col_sum[j] + jnp.sum(et.reshape(tq // 8, 8, tk), axis=0)

    @pl.when(hits_diag)
    def _diag_tile():
        # masked_fill(eye(B), -1.0): single iota difference vs one scalar offset.
        diff = (jax.lax.broadcasted_iota(jnp.int32, (tq, tk), 0)
                - jax.lax.broadcasted_iota(jnp.int32, (tq, tk), 1))
        on_diag = diff == (col0 - row0)
        _accumulate(jnp.where(on_diag, exp_masked, e))

    @pl.when(jnp.logical_not(hits_diag))
    def _off_diag_tile():
        _accumulate(e)

    # End of the column sweep for this row tile: fold in sum_i log(rowsum_i).
    @pl.when(j == num_j - 1)
    def _row_tile_done():
        row_lse_acc[...] += jnp.sum(jnp.log(row_sum[...]), axis=0, keepdims=True)

    # Final grid step: all row/column sums complete -> scalar loss.
    @pl.when((i == num_i - 1) & (j == num_j - 1))
    def _finalize():
        col_full = jnp.sum(col_sum[...], axis=1)     # (num_j, tk): one 8->1 sublane reduce
        col_total = jnp.sum(jnp.log(col_full))       # sum_j log(colsum_j)
        total = row_lse_acc[...] + col_total         # (1, 1)
        # lse = log(sum) + shift, target (masked diagonal) logit is -1, so
        # loss = 0.5 * (sum_rows + sum_cols) / B + shift + 1.
        out_ref[...] = total * jnp.float32(0.5 / batch) + jnp.float32(1.0 + shift)


def contrastive_loss(image_embeds, text_embeds, temperature=0.07,
                     *, block_q=512, block_k=512):
    B, D = image_embeds.shape
    assert text_embeds.shape == (B, D)
    tq = min(block_q, B)
    tk = min(block_k, B)
    assert B % tq == 0 and B % tk == 0, "batch must be divisible by the tile sizes"
    assert tq % 8 == 0, "row tile must be a multiple of 8 sublanes"
    num_i, num_j = B // tq, B // tk

    temperature = float(temperature)
    inv_temp = 1.0 / temperature
    # Unshifted exp saves a per-element subtract and is f32-safe for T >= ~0.02;
    # statically fall back to a constant 1/T shift for smaller temperatures.
    shift = inv_temp if temperature < 0.02 else 0.0

    # Prologue: normalize once, fold 1/T into the image rows, emit bf16.
    img_n, txt_n = _normalize_embeds(image_embeds, text_embeds, inv_temp)

    kernel = functools.partial(_contrastive_loss_kernel, shift=shift, batch=B)

    cost = pl.CostEstimate(
        flops=2 * B * B * D + 6 * B * D,
        transcendentals=B * B + 4 * B,
        bytes_accessed=num_i * B * D * 2 + B * D * 2 + 4)

    grid_spec = pltpu.PrefetchScalarGridSpec(
        num_scalar_prefetch=0,
        grid=(num_i, num_j),
        in_specs=[
            # Image row tile: block index independent of j -> DMAed once per row sweep.
            pl.BlockSpec((tq, D), lambda i, j: (i, 0)),
            # Text column tile: streamed (double-buffered) along the inner axis.
            # TODO(synk): v5e -- add pipeline_mode=pl.Buffered(3) here once tiles are large.
            pl.BlockSpec((tk, D), lambda i, j: (j, 0)),
        ],
        out_specs=pl.BlockSpec((1, 1), lambda i, j: (0, 0)),
        scratch_shapes=[
            pltpu.VMEM((tq, 1), jnp.float32),          # per-row running sum of exp
            pltpu.VMEM((num_j, 8, tk), jnp.float32),   # per-column partials (sublane-grouped)
            pltpu.VMEM((1, 1), jnp.float32),           # running sum_i log(rowsum_i)
        ],
    )

    out = pl.pallas_call(
        kernel,
        out_shape=jax.ShapeDtypeStruct((1, 1), jnp.float32),
        grid_spec=grid_spec,
        cost_estimate=cost,
        compiler_params=pltpu.CompilerParams(
            # Both grid axes carry cross-step accumulators -> "arbitrary".
            # TODO(synk): v7x megacore -- split the row-tile axis across the 2 TensorCores
            # with per-core col_sum/row_lse partials and a tiny epilogue combine.
            # TODO(synk): v5e/v6e -- if B*D*2 bytes fits, cache the normalized bf16 text in a
            # persistent VMEM scratch during the i==0 sweep and read it from VMEM for i>0.
            dimension_semantics=("arbitrary", "arbitrary"),
            # Comfortably under v7x's 64 MiB physical VMEM; can be raised on v5e/v6e.
            vmem_limit_bytes=48 * 1024 * 1024),
    )(img_n, txt_n)
    return out[0, 0]


def _reference_loss(image_embeds, text_embeds, temperature=0.07):
    # Pure-JAX (f32) reference mirroring the PyTorch module.
    def norm(x):
        return x / jnp.maximum(jnp.linalg.norm(x, axis=-1, keepdims=True), 1e-12)

    img = norm(image_embeds.astype(jnp.float32))
    txt = norm(text_embeds.astype(jnp.float32))
    logits = img @ txt.T / temperature
    B = logits.shape[0]
    logits = jnp.where(jnp.eye(B, dtype=bool), -1.0, logits)
    labels = jnp.arange(B)
    li = jnp.mean(jax.nn.logsumexp(logits, axis=1) - logits[labels, labels])
    lt = jnp.mean(jax.nn.logsumexp(logits.T, axis=1) - logits[labels, labels])
    return (li + lt) / 2.0


if __name__ == "__main__":
    key = jax.random.PRNGKey(0)
    k1, k2 = jax.random.split(key)
    B, D = 16, 32  # small paired-embedding batch, hidden dim 32
    image_embeds = jax.random.normal(k1, (B, D), dtype=jnp.float32)
    text_embeds = jax.random.normal(k2, (B, D), dtype=jnp.float32)

    ref = _reference_loss(image_embeds, text_embeds, temperature=0.07)

    # Single-tile path (grid = (1, 1), diagonal tile only).
    loss_single = jax.block_until_ready(
        contrastive_loss(image_embeds, text_embeds, temperature=0.07))
    # Multi-tile path (grid = (2, 2)) exercising the online accumulators and the
    # gated diagonal mask (off-diagonal tiles skip the mask path entirely).
    loss_tiled = jax.block_until_ready(
        contrastive_loss(image_embeds, text_embeds, temperature=0.07,
                         block_q=8, block_k=8))

    # bf16 MXU operands -> compare against the f32 reference with a loose tolerance.
    assert jnp.allclose(loss_single, ref, rtol=5e-2, atol=5e-2), (loss_single, ref)
    assert jnp.allclose(loss_tiled, ref, rtol=5e-2, atol=5e-2), (loss_tiled, ref)
    # The two tilings of the kernel itself must agree to rounding error.
    assert jnp.allclose(loss_single, loss_tiled, rtol=1e-4, atol=1e-4), (
        loss_single, loss_tiled)

    print("KERNEL_OK")
</pallas_src>

<mosaic_0001>
module attributes {stable_mosaic.version = 11 : i64} {
  func.func @_normalize_kernel(%arg0: i32, %arg1: memref<16x32xf32, #tpu.memory_space<vmem>>, %arg2: memref<16x32xf32, #tpu.memory_space<vmem>>, %arg3: memref<16x32xbf16, #tpu.memory_space<vmem>>, %arg4: memref<16x32xbf16, #tpu.memory_space<vmem>>) attributes {dimension_semantics = [#tpu.dimension_semantics<parallel>], iteration_bounds = array<i64: 1>, scalar_prefetch = 0 : i64, scratch_operands = 0 : i64, tpu.core_type = #tpu.core_type<tc>, window_params = [{transform_indices = @transform_0, window_bounds = array<i64: 16, 32>}, {transform_indices = @transform_1, window_bounds = array<i64: 16, 32>}, {transform_indices = @transform_2, window_bounds = array<i64: 16, 32>}, {transform_indices = @transform_3, window_bounds = array<i64: 16, 32>}]} {
    %c0 = arith.constant 0 : index
    %c0_0 = arith.constant 0 : index
    %0 = vector.load %arg1[%c0, %c0_0] : memref<16x32xf32, #tpu.memory_space<vmem>>, vector<16x32xf32>
    %1 = arith.mulf %0, %0 : vector<16x32xf32>
    %cst = arith.constant dense<0.000000e+00> : vector<16xf32>
    %2 = vector.multi_reduction <add>, %1, %cst [1] : vector<16x32xf32> to vector<16xf32>
    %3 = vector.shape_cast %2 : vector<16xf32> to vector<16x1xf32>
    %cst_1 = arith.constant 1.000000e-24 : f32
    %4 = vector.broadcast %cst_1 : f32 to vector<16x1xf32>
    %5 = arith.maximumf %3, %4 : vector<16x1xf32>
    %6 = math.rsqrt %5 : vector<16x1xf32>
    %cst_2 = arith.constant 14.2857141 : f32
    %7 = vector.broadcast %cst_2 : f32 to vector<16x1xf32>
    %8 = arith.mulf %6, %7 : vector<16x1xf32>
    %9 = vector.broadcast %8 : vector<16x1xf32> to vector<16x32xf32>
    %10 = arith.mulf %0, %9 : vector<16x32xf32>
    %11 = arith.truncf %10 : vector<16x32xf32> to vector<16x32xbf16>
    %c0_3 = arith.constant 0 : index
    %c0_4 = arith.constant 0 : index
    %12 = vector.load %arg3[%c0_3, %c0_4] : memref<16x32xbf16, #tpu.memory_space<vmem>>, vector<16x32xbf16>
    tpu.vector_store %arg3[%c0_3, %c0_4], %11 {strides = array<i32>} : memref<16x32xbf16, #tpu.memory_space<vmem>>, vector<16x32xbf16>,
    %c0_5 = arith.constant 0 : index
    %c0_6 = arith.constant 0 : index
    %13 = vector.load %arg2[%c0_5, %c0_6] : memref<16x32xf32, #tpu.memory_space<vmem>>, vector<16x32xf32>
    %14 = arith.mulf %13, %13 : vector<16x32xf32>
    %cst_7 = arith.constant dense<0.000000e+00> : vector<16xf32>
    %15 = vector.multi_reduction <add>, %14, %cst_7 [1] : vector<16x32xf32> to vector<16xf32>
    %16 = vector.shape_cast %15 : vector<16xf32> to vector<16x1xf32>
    %cst_8 = arith.constant 1.000000e-24 : f32
    %17 = vector.broadcast %cst_8 : f32 to vector<16x1xf32>
    %18 = arith.maximumf %16, %17 : vector<16x1xf32>
    %19 = math.rsqrt %18 : vector<16x1xf32>
    %20 = vector.broadcast %19 : vector<16x1xf32> to vector<16x32xf32>
    %21 = arith.mulf %13, %20 : vector<16x32xf32>
    %22 = arith.truncf %21 : vector<16x32xf32> to vector<16x32xbf16>
    %c0_9 = arith.constant 0 : index
    %c0_10 = arith.constant 0 : index
    %23 = vector.load %arg4[%c0_9, %c0_10] : memref<16x32xbf16, #tpu.memory_space<vmem>>, vector<16x32xbf16>
    tpu.vector_store %arg4[%c0_9, %c0_10], %22 {strides = array<i32>} : memref<16x32xbf16, #tpu.memory_space<vmem>>, vector<16x32xbf16>,
    return
  }
  func.func @transform_0(%arg0: i32) -> (i32, i32) {
    %c0_i32 = arith.constant 0 : i32
    %c0_i32_0 = arith.constant 0 : i32
    return %arg0, %c0_i32 : i32, i32
  }
  func.func @transform_1(%arg0: i32) -> (i32, i32) {
    %c0_i32 = arith.constant 0 : i32
    %c0_i32_0 = arith.constant 0 : i32
    return %arg0, %c0_i32 : i32, i32
  }
  func.func @transform_2(%arg0: i32) -> (i32, i32) {
    %c0_i32 = arith.constant 0 : i32
    %c0_i32_0 = arith.constant 0 : i32
    return %arg0, %c0_i32 : i32, i32
  }
  func.func @transform_3(%arg0: i32) -> (i32, i32) {
    %c0_i32 = arith.constant 0 : i32
    %c0_i32_0 = arith.constant 0 : i32
    return %arg0, %c0_i32 : i32, i32
  }
}

</mosaic_0001>

<bundles_post_ra>
// kernel: tpu_custom_call.1
= control target key start
LH: loop header
LB: loop body
LE: loop exit
PB: predicated region body
PF: predicated region fallthrough
CT: control target
= control target key end

     0   :  { %9 = vsyncpa [#allocation3], 0  ;;  %s289_s0 = inlined_call_operand.hbm [shape: f32[16,32], index: 0, kind: input, shape index: {}]   ;;  %s290_s1 = inlined_call_operand.hbm [shape: f32[16,32], index: 1, kind: input, shape index: {}]   ;;  %s291_s2 = inlined_call_operand.hbm [shape: bf16[16,32], index: 2, kind: output, shape index: {0}]   ;;  %s292_s3 = inlined_call_operand.hbm [shape: bf16[16,32], index: 3, kind: output, shape index: {1}]  }
   0x1   :  { %10 = vsyncpa [#allocation6], 0 }
   0x2   :  { %11 = vsyncpa [#allocation4], 0 }
   0x3   :  { %12 = vsyncpa [#allocation9], 0  ;;  %s245_s12 = smov [#allocation2]  }
   0x4   :  { %s18_s13 = sshll.u32 %s245_s12, 4  ;;  %s19_s13 = int_to_ptr.vmem [resolvable:$true] %s18_s13 }
   0x5   :  { %s165_s14 = scalar_lea.vmem %s19_s13, 256  ;;  %p170_p1 = scmp.lt.s32.totalorder %s19_s13, %s19_s13 }
   0x6   :  { %p166_p0 = scmp.ne.s32.totalorder %s19_s13, %s165_s14  ;;  %p171_p2 = scmp.lt.s32.totalorder %s165_s14, %s165_s14 }
   0x8   :  { %p172_p3 = por %p171_p2, %p170_p1 }
   0xa   :  { %p173_p4 = pnand %p172_p3, %p166_p0 }
   0xc   :  { %176 = shalt.err (!%p173_p4)
}
   0xd   :  { %s246_s15 = smov 128   ;;  %s247_s16 = smov 8  }
   0xe   :  { %24 = dma.hbm_to_vmem [thread:$0]  %s289_s0, 256, %s19_s13, [#allocation3], %s246_s15, %s246_s15, %s247_s16  }
   0xf   :  { %s248_s19 = smov [#allocation5]  }
  0x10   :  { %s30_s20 = sshll.u32 %s248_s19, 4  ;;  %s31_s20 = int_to_ptr.vmem [resolvable:$true] %s30_s20 }
  0x11   :  { %s185_s21 = scalar_lea.vmem %s31_s20, 256  ;;  %p190_p6 = scmp.lt.s32.totalorder %s31_s20, %s31_s20 }
  0x12   :  { %p186_p5 = scmp.ne.s32.totalorder %s31_s20, %s185_s21  ;;  %p191_p7 = scmp.lt.s32.totalorder %s185_s21, %s185_s21 }
  0x14   :  { %p192_p8 = por %p191_p7, %p190_p6 }
  0x16   :  { %p193_p9 = pnand %p192_p8, %p186_p5 }
  0x18   :  { %196 = shalt.err (!%p193_p9)
}
  0x19   :  { %36 = dma.hbm_to_vmem [thread:$0]  %s290_s1, 256, %s31_s20, [#allocation6], %s246_s15, %s246_s15, %s247_s16  }
  0x1a   :  { %237 = dma.done.wait [#allocation3], 256  }
  0x1b   :  { %238 = vsyncadd [#allocation3], 4294967040 }
  0x1c   :  { %239 = dma.done.wait [#allocation6], 256  }
  0x1d   :  { %240 = vsyncadd [#allocation6], 4294967040  ;;  %v43_v0 = vld [vmem:[#allocation2] sm:$0xff]  ;;  %vm47_vm0 = vcmask 261120   ;;  %v73_v1 = vld [vmem:[#allocation5] sm:$0xff]  ;;  %vm70_vm1 = vcmask 257024  }
  0x1e   :  { %v44_v2 = vld [vmem:[#allocation2 + $0x8] sm:$0xff]  ;;  %v45_v3 = vmul.f32 %v43_v0, %v43_v0  ;;  %v75_v4 = vmul.f32 %v73_v1, %v73_v1  ;;  %v74_v6 = vld [vmem:[#allocation5 + $0x8] sm:$0xff]  ;;  %s249_s0 = smov [#allocation8]   ;;  %s250_s24 = smov [#allocation7]  }
  0x1f   :  { %v46_v5 = vmul.f32 %v44_v2, %v44_v2  ;;  %v76_v7 = vmul.f32 %v74_v6, %v74_v6  ;;  %s116_s1 = sshll.u32 %s249_s0, 4  ;;  %s104_s25 = sshll.u32 %s250_s24, 4  ;;  %s117_s1 = int_to_ptr.vmem [resolvable:$true] %s116_s1  ;;  %s105_s25 = int_to_ptr.vmem [resolvable:$true] %s104_s25 }
  0x20   :  { %v48_v8 = vsel %vm47_vm0, %v45_v3, 0.0  ;;  %v77_v9 = vsel %vm47_vm0, %v75_v4, 0.0  ;;  %s197_s26 = scalar_lea.vmem %s117_s1, 128  ;;  %p202_p11 = scmp.lt.s32.totalorder %s117_s1, %s117_s1 }
  0x21   :  { %49 = vadd.xlane.f32.xlu0 %v48_v8  ;;  %78 = vadd.xlane.f32.xlu1 %v77_v9  ;;  %v51_v10 = vsel %vm47_vm0, %v46_v5, 0.0  ;;  %v80_v11 = vsel %vm47_vm0, %v76_v7, 0.0  ;;  %p198_p10 = scmp.ne.s32.totalorder %s117_s1, %s197_s26  ;;  %p203_p12 = scmp.lt.s32.totalorder %s197_s26, %s197_s26 }
  0x23   :  { %p204_p13 = por %p203_p12, %p202_p11 }
  0x25   :  { %52 = vadd.xlane.f32.xlu0 %v51_v10  ;;  %81 = vadd.xlane.f32.xlu1 %v80_v11  ;;  %p205_p0 = pnand %p204_p13, %p198_p10 }
  0xaa   :  { %v50_v12 = vpop.xlane.xlu0 %49  ;;  %v79_v13 = vpop.xlane.xlu1 %78 }
  0xab   :  { %v54_v14 = vmax.f32 %v50_v12, 1e-24  ;;  %v83_v15 = vmax.f32 %v79_v13, 1e-24 }
  0xad   :  { %149 = vrsqrt.f32 %v54_v14 }
  0xae   :  { %151 = vrsqrt.f32 %v83_v15  ;;  %v53_v16 = vpop.xlane.xlu0 %52  ;;  %v82_v17 = vpop.xlane.xlu1 %81 }
  0xaf   :  { %v55_v18 = vmax.f32 %v53_v16, 1e-24  ;;  %v84_v19 = vmax.f32 %v82_v17, 1e-24 }
  0xb1   :  { %153 = vrsqrt.f32 %v55_v18 }
  0xb2   :  { %155 = vrsqrt.f32 %v84_v19 }
  0xba   :  { %v150_v20 = vpop.eup %149 }
  0xbb   :  { %v152_v21 = vpop.eup %151  ;;  %v58_v22 = vmul.f32 14.285714, %v150_v20 }
  0xbc   :  { %v87_v23 = vmul.f32 %v152_v21, %v73_v1 }
  0xbd   :  { %v60_v24 = vmul.f32 %v58_v22, %v43_v0 }
  0xbe   :  { %v154_v25 = vpop.eup %153  ;;  %v139_v26 = vpack.c.bf16 %v87_v23, %v87_v23 }
  0xbf   :  { %v156_v27 = vpop.eup %155  ;;  %v137_v28 = vpack.c.bf16 %v60_v24, %v60_v24  ;;  %v59_v29 = vmul.f32 14.285714, %v154_v25 }
  0xc0   :  { %v88_v30 = vmul.f32 %v156_v27, %v74_v6  ;;  %97 = vst.msk [vmem:[#allocation8] sm:$0xf] %vm70_vm1, %v139_v26 }
  0xc1   :  { %v61_v31 = vmul.f32 %v59_v29, %v44_v2  ;;  %71 = vst.msk [vmem:[#allocation7] sm:$0xf] %vm70_vm1, %v137_v28 }
  0xc2   :  { %v140_v32 = vpack.c.bf16 %v88_v30, %v88_v30 }
  0xc3   :  { %v138_v33 = vpack.c.bf16 %v61_v31, %v61_v31 }
  0xc4   :  { %98 = vst.msk [vmem:[#allocation8 + $0x4] sm:$0xf] %vm70_vm1, %v140_v32 }
  0xc5   :  { %72 = vst.msk [vmem:[#allocation7 + $0x4] sm:$0xf] %vm70_vm1, %v138_v33 }
  0xc6   :  { %208 = shalt.err (!%p205_p0)
}
  0xc7   :  { %s251_s27 = smov 64   ;;  %s252_s28 = smov 4  }
  0xc8   :  { %122 = dma.vmem_to_hbm [thread:$0]  %s117_s1, 128, %s292_s3, [#allocation9], %s251_s27, %s251_s27, %s252_s28  }
  0xc9   :  { %s217_s4 = scalar_lea.vmem %s105_s25, 128  ;;  %p222_p2 = scmp.lt.s32.totalorder %s105_s25, %s105_s25 }
  0xca   :  { %p218_p1 = scmp.ne.s32.totalorder %s105_s25, %s217_s4  ;;  %p223_p3 = scmp.lt.s32.totalorder %s217_s4, %s217_s4 }
  0xcc   :  { %p224_p4 = por %p223_p3, %p222_p2 }
  0xce   :  { %p225_p5 = pnand %p224_p4, %p218_p1 }
  0xd0   :  { %228 = shalt.err (!%p225_p5)
}
  0xd1   :  { %110 = dma.vmem_to_hbm [thread:$0]  %s105_s25, 128, %s291_s2, [#allocation4], %s251_s27, %s251_s27, %s252_s28  }
  0xd2   :  { %241 = dma.done.wait [#allocation4], 128  }
  0xd3   :  { %242 = vsyncadd [#allocation4], 4294967168 }
  0xd4   :  { %243 = dma.done.wait [#allocation9], 128  }
  0xd5   :  { %244 = vsyncadd [#allocation9], 4294967168 }
  0xd6   :  { %129 = vsyncpa [#allocation3], 1 }
  0xd7   :  { %130 = vsyncpa [#allocation6], 1 }
  0xd8   :  { %131 = vsyncpa [#allocation4], 1 }
  0xd9   :  { %132 = vsyncpa [#allocation9], 1 }

</bundles_post_ra>
